<compile_context>
chip_gen: v5e
topology: v5e:2x2
jax: 0.10.0
libtpu: 0.0.40
codegen_flags: <defaults>
</compile_context>

<pallas_src>
import functools

import jax
import jax.numpy as jnp
import numpy as np
from jax.experimental import pallas as pl
from jax.experimental.pallas import tpu as pltpu


def _ru(x, m):
    return -(-x // m) * m


# ----------------------------------------------------------------------------
# Hardware-aware configuration
# ----------------------------------------------------------------------------
def _vmem_config():
    """Returns (block_budget_bytes, vmem_limit_bytes, two_cores)."""
    cap = None
    try:
        cap = int(pltpu.get_tpu_info().vmem_capacity_bytes)
    except Exception:
        cap = None
    kind = ""
    try:
        kind = jax.devices()[0].device_kind.lower()
    except Exception:
        pass
    # v7x: 64 MiB VMEM per TensorCore, 2 TensorCores/chip.  v5e/v6e: 128 MiB, 1 TC.
    is_v7x = ("7" in kind) or (cap is not None and cap <= (96 << 20))
    if cap is None:
        cap = (64 << 20) if is_v7x else (128 << 20)
    limit = min(int(cap * 3 // 4), 100 << 20)   # scoped-VMEM limit, with headroom
    budget = min(int(cap * 2 // 5), 56 << 20)   # per-block working-set budget
    return budget, limit, is_v7x


def _make_taps(w):
    """[(weight, offsets)], fusing mirrored equal-weight taps (x[i]+x[k-1-i])."""
    k = len(w)
    if all(abs(w[i] - w[k - 1 - i]) < 1e-12 for i in range(k // 2)):
        taps = [(w[i], (i, k - 1 - i)) for i in range(k // 2)]
        if k % 2:
            taps.append((w[k // 2], (k // 2,)))
        return tuple(taps)
    return tuple((w[i], (i,)) for i in range(k))


# ----------------------------------------------------------------------------
# Kernel bodies
# ----------------------------------------------------------------------------
def _blur_lane_dense_kernel(x_ref, o_ref, xp_ref, *, wv_taps, wh_taps, w2d,
                            py0, px0, out_h, out_w):
    """FIR filter, lane-dense layout (tap axes are leading dims).

    x_ref : (h_in, w_in, S, L)   un-padded input block (input dtype)
    o_ref : (out_h, out_w, S, L)
    xp_ref: (hp, wp, S, L)       zero-padded staging scratch (input dtype),
                                 persists across grid steps.
    """
    h_in, w_in = x_ref.shape[0], x_ref.shape[1]
    hp, wp, s, l = xp_ref.shape
    py1 = hp - h_in - py0
    px1 = wp - w_in - px0
    dt = xp_ref.dtype

    if (py0, py1, px0, px1) == (0, 0, 0, 0):
        src = x_ref                      # no padding -> skip staging entirely
    else:
        # Border strips are identical every step and the scratch persists, so
        # zero them only on the first step each core executes.  Grid axis 1 is
        # "arbitrary" (in-order per core), so every core sees program_id(1)==0
        # before any compute regardless of how axis 0 is split across cores.
        @pl.when(pl.program_id(1) == 0)
        def _():
            if px0 > 0:
                xp_ref[:, 0:px0, :, :] = jnp.zeros((hp, px0, s, l), dt)
            if px1 > 0:
                xp_ref[:, wp - px1:wp, :, :] = jnp.zeros((hp, px1, s, l), dt)
            if py0 > 0:
                xp_ref[0:py0, :, :, :] = jnp.zeros((py0, wp, s, l), dt)
            if py1 > 0:
                xp_ref[hp - py1:hp, :, :, :] = jnp.zeros((py1, wp, s, l), dt)

        xp_ref[py0:py0 + h_in, px0:px0 + w_in, :, :] = x_ref[...]
        src = xp_ref

    if w2d is None:
        # Separable FIR; mirrored taps are added first, multiplied once.
        v = None
        for wgt, offs in wv_taps:                       # vertical pass
            t = src[offs[0]:offs[0] + out_h, :, :, :].astype(jnp.float32)
            for o in offs[1:]:
                t = t + src[o:o + out_h, :, :, :].astype(jnp.float32)
            v = wgt * t if v is None else v + wgt * t
        acc = None
        for wgt, offs in wh_taps:                       # horizontal pass
            t = v[:, offs[0]:offs[0] + out_w]
            for o in offs[1:]:
                t = t + v[:, o:o + out_w]
            acc = wgt * t if acc is None else acc + wgt * t
    else:
        # Generic (non-separable) 2-D kernel: direct kh*kw taps.
        acc = None
        for i, wrow in enumerate(w2d):
            row = src[i:i + out_h, :, :, :].astype(jnp.float32)
            for j, wij in enumerate(wrow):
                term = wij * row[:, j:j + out_w]
                acc = term if acc is None else acc + term

    o_ref[...] = acc.astype(o_ref.dtype)


def _blur_rows_kernel(x_ref, o_ref, xp_ref, *, wv_taps, wh_taps, w2d,
                      py0, px0, out_h, out_w):
    """FIR filter, natural (B, H, W) layout (small N*C / large spatial).

    x_ref : (TB, h_in, w_in)   un-padded input block
    o_ref : (TB, out_h, out_w)
    xp_ref: (TB, hp, wp)       zero-padded staging scratch (input dtype)
    """
    tb, h_in, w_in = x_ref.shape
    _, hp, wp = xp_ref.shape
    py1 = hp - h_in - py0
    px1 = wp - w_in - px0
    dt = xp_ref.dtype

    if (py0, py1, px0, px1) == (0, 0, 0, 0):
        src = x_ref
    else:
        @pl.when(pl.program_id(1) == 0)
        def _():
            if px0 > 0:
                xp_ref[:, :, 0:px0] = jnp.zeros((tb, hp, px0), dt)
            if px1 > 0:
                xp_ref[:, :, wp - px1:wp] = jnp.zeros((tb, hp, px1), dt)
            if py0 > 0:
                xp_ref[:, 0:py0, :] = jnp.zeros((tb, py0, wp), dt)
            if py1 > 0:
                xp_ref[:, hp - py1:hp, :] = jnp.zeros((tb, py1, wp), dt)

        xp_ref[:, py0:py0 + h_in, px0:px0 + w_in] = x_ref[...]
        src = xp_ref

    if w2d is None:
        # Vertical taps shift the sublane axis (relayouts land on the XLU
        # slot, idle here); horizontal taps shift the lane axis.
        # TODO(synk): restaging the block to (hp, TB, wp) would remove the
        # sublane relayouts at the cost of two in-kernel transposes.
        v = None
        for wgt, offs in wv_taps:
            t = src[:, offs[0]:offs[0] + out_h, :].astype(jnp.float32)
            for o in offs[1:]:
                t = t + src[:, o:o + out_h, :].astype(jnp.float32)
            v = wgt * t if v is None else v + wgt * t
        acc = None
        for wgt, offs in wh_taps:
            t = v[:, :, offs[0]:offs[0] + out_w]
            for o in offs[1:]:
                t = t + v[:, :, o:o + out_w]
            acc = wgt * t if acc is None else acc + wgt * t
    else:
        acc = None
        for i, wrow in enumerate(w2d):
            row = src[:, i:i + out_h, :].astype(jnp.float32)
            for j, wij in enumerate(wrow):
                term = wij * row[:, :, j:j + out_w]
                acc = term if acc is None else acc + term

    o_ref[...] = acc.astype(o_ref.dtype)


# ----------------------------------------------------------------------------
# Block-size heuristics
# ----------------------------------------------------------------------------
def _pick_main_grouping(b, h_in, w_in, hp, wp, out_h, out_w, itemsize,
                        budget, two_cores):
    """Pick (S, G) for the lane-dense layout, or None -> natural-layout path."""
    lane = 128
    nb = -(-b // lane)                         # number of 128-wide lane groups

    def block_bytes(s):
        slab = _ru(s, 8) * lane                # physical (8,128)-padded slab
        return (2 * h_in * w_in * slab * itemsize         # dbl-buffered input
                + 2 * out_h * out_w * slab * itemsize     # dbl-buffered output
                + hp * wp * slab * itemsize               # staging scratch
                + (out_h * wp + out_h * out_w) * slab * 4)  # f32 compute temps

    if block_bytes(1) > budget:
        return None

    best = None
    for s in range(1, nb + 1):
        if block_bytes(s) > budget:
            continue
        g = -(-nb // s)
        waste = g * s - nb                     # zero-padded lane groups (extra HBM)
        if waste * 8 > nb:                     # cap padding waste at ~12.5%
            continue
        aligned = (s % 8 == 0) or (s == nb)    # whole-(8,128)-tile slabs
        even = (g % 2 == 0) if two_cores else True   # balanced v7x megacore split
        key = (even, -waste, aligned, -g, s)
        if best is None or key > best[0]:
            best = (key, s, g)
    if best is None:
        return None
    return best[1], best[2]


def _pick_row_tb(b, h_in, w_in, hp, wp, out_h, out_w, itemsize, budget,
                 two_cores):
    """Batch-chunk size for the natural-layout path."""
    tile_in = _ru(h_in, 8) * _ru(w_in, 128)
    tile_pad = _ru(hp, 8) * _ru(wp, 128)
    tile_v = _ru(out_h, 8) * _ru(wp, 128)
    tile_out = _ru(out_h, 8) * _ru(out_w, 128)
    per = (2 * tile_in * itemsize + 2 * tile_out * itemsize
           + tile_pad * itemsize + (tile_v + tile_out) * 4)
    tb = max(1, min(b, budget // max(per, 1)))
    if two_cores and tb >= b and b > 1:
        tb = -(-b // 2)                        # >= 2 steps so both TCs get work
    return int(tb)


# ----------------------------------------------------------------------------
# Public wrapper (matches Blur.forward semantics: upfirdn2d with up=down=1)
# ----------------------------------------------------------------------------
def blur(x, blur_kernel=(1, 3, 3, 1), pad=(2, 1), upsample_factor=1,
         *, force_row=False):
    kk = np.asarray(blur_kernel, dtype=np.float32)
    scale = float(upsample_factor) ** 2 if upsample_factor > 1 else 1.0

    if kk.ndim == 1:                           # separable path (module usage)
        k1n = kk / kk.sum()
        # Flip for correlation->convolution (identity for symmetric kernels).
        wv_taps = _make_taps(tuple(float(v) for v in k1n[::-1]))
        wh_taps = _make_taps(tuple(float(v) * scale for v in k1n[::-1]))
        w2d = None
        kh = kw = int(kk.shape[0])
    else:                                      # generic 2-D kernel
        k2 = kk / kk.sum()
        kflip = np.flip(k2, (0, 1)) * scale
        kh, kw = k2.shape
        wv_taps = wh_taps = None
        w2d = tuple(tuple(float(kflip[i, j]) for j in range(kw))
                    for i in range(kh))

    pad = tuple(int(p) for p in pad)
    if len(pad) == 2:
        pad_x0, pad_x1, pad_y0, pad_y1 = pad[0], pad[1], pad[0], pad[1]
    else:
        pad_x0, pad_x1, pad_y0, pad_y1 = pad

    n, c, h, w = x.shape
    b = n * c
    xb = x.reshape(b, h, w)

    # Negative pads (crop) handled here; positive pads fused into the kernel.
    cy0, cy1 = max(-pad_y0, 0), max(-pad_y1, 0)
    cx0, cx1 = max(-pad_x0, 0), max(-pad_x1, 0)
    if cy0 or cy1 or cx0 or cx1:
        xb = xb[:, cy0:h - cy1, cx0:w - cx1]
    h_in, w_in = h - cy0 - cy1, w - cx0 - cx1
    py0, py1 = max(pad_y0, 0), max(pad_y1, 0)
    px0, px1 = max(pad_x0, 0), max(pad_x1, 0)
    hp, wp = h_in + py0 + py1, w_in + px0 + px1
    out_h, out_w = hp - kh + 1, wp - kw + 1

    itemsize = int(x.dtype.itemsize)
    budget, vmem_limit, two_cores = _vmem_config()

    grouping = None
    if not force_row and b >= 128:
        grouping = _pick_main_grouping(b, h_in, w_in, hp, wp, out_h, out_w,
                                       itemsize, budget, two_cores)

    ntaps = (kh + kw) if w2d is None else kh * kw
    cost = pl.CostEstimate(
        flops=int(2 * b * out_h * out_w * ntaps), transcendentals=0,
        bytes_accessed=int((b * h_in * w_in + b * out_h * out_w) * itemsize))

    if grouping is not None:
        # ---- lane-dense path: (G, H, W, S, 128) layout ----
        lane = 128
        s, g = grouping
        b_pad = g * s * lane
        if b_pad != b:
            xb = jnp.concatenate(
                [xb, jnp.zeros((b_pad - b, h_in, w_in), xb.dtype)], axis=0)
        # Fold batch*channel onto the 128-wide lane axis so every tap slice and
        # store is an unmasked full-width slab access.  NOTE: this transpose
        # (and its inverse) is a full HBM pass each; it pays for itself only
        # because in-kernel accesses become unmasked vld/vst.
        xt = xb.reshape(g, s, lane, h_in, w_in).transpose(0, 3, 4, 1, 2)

        if two_cores and g % 2 == 0:
            g_par, g_arb = 2, g // 2           # balanced split across v7x TCs
        else:
            g_par, g_arb = 1, g

        kernel_fn = functools.partial(
            _blur_lane_dense_kernel, wv_taps=wv_taps, wh_taps=wh_taps, w2d=w2d,
            py0=py0, px0=px0, out_h=out_h, out_w=out_w)

        out = pl.pallas_call(
            kernel_fn,
            out_shape=jax.ShapeDtypeStruct((g, out_h, out_w, s, lane), x.dtype),
            grid_spec=pltpu.PrefetchScalarGridSpec(
                num_scalar_prefetch=0,
                grid=(g_par, g_arb),
                in_specs=[pl.BlockSpec(
                    (None, h_in, w_in, s, lane),
                    lambda p, a: (p * g_arb + a, 0, 0, 0, 0))],
                out_specs=pl.BlockSpec(
                    (None, out_h, out_w, s, lane),
                    lambda p, a: (p * g_arb + a, 0, 0, 0, 0)),
                scratch_shapes=[pltpu.VMEM((hp, wp, s, lane), x.dtype)],
            ),
            compiler_params=pltpu.CompilerParams(
                dimension_semantics=("parallel", "arbitrary"),
                vmem_limit_bytes=vmem_limit),
            cost_estimate=cost,
        )(xt)
        out = out.transpose(0, 3, 4, 1, 2).reshape(b_pad, out_h, out_w)[:b]
    else:
        # ---- natural-layout path: no wrapper transpose, no wrapper jnp.pad ----
        tb = _pick_row_tb(b, h_in, w_in, hp, wp, out_h, out_w, itemsize,
                          budget, two_cores)
        steps = -(-b // tb)
        b_pad = steps * tb
        if b_pad != b:
            xb = jnp.concatenate(
                [xb, jnp.zeros((b_pad - b, h_in, w_in), xb.dtype)], axis=0)
        if two_cores and steps % 2 == 0:
            s_par, s_arb = 2, steps // 2
        else:
            s_par, s_arb = 1, steps

        kernel_fn = functools.partial(
            _blur_rows_kernel, wv_taps=wv_taps, wh_taps=wh_taps, w2d=w2d,
            py0=py0, px0=px0, out_h=out_h, out_w=out_w)

        out = pl.pallas_call(
            kernel_fn,
            out_shape=jax.ShapeDtypeStruct((b_pad, out_h, out_w), x.dtype),
            grid_spec=pltpu.PrefetchScalarGridSpec(
                num_scalar_prefetch=0,
                grid=(s_par, s_arb),
                in_specs=[pl.BlockSpec(
                    (tb, h_in, w_in),
                    lambda p, a: (p * s_arb + a, 0, 0))],
                out_specs=pl.BlockSpec(
                    (tb, out_h, out_w),
                    lambda p, a: (p * s_arb + a, 0, 0)),
                scratch_shapes=[pltpu.VMEM((tb, hp, wp), x.dtype)],
            ),
            compiler_params=pltpu.CompilerParams(
                dimension_semantics=("parallel", "arbitrary"),
                vmem_limit_bytes=vmem_limit),
            cost_estimate=cost,
        )(xb)
        out = out[:b]

    return out.reshape(n, c, out_h, out_w)


# ----------------------------------------------------------------------------
# Pure-JAX reference (upfirdn2d_native with up=down=1)
# ----------------------------------------------------------------------------
def blur_reference(x, blur_kernel=(1, 3, 3, 1), pad=(2, 1), upsample_factor=1):
    kk = np.asarray(blur_kernel, dtype=np.float32)
    k2 = np.outer(kk, kk) if kk.ndim == 1 else kk
    k2 = k2 / k2.sum()
    if upsample_factor > 1:
        k2 = k2 * (upsample_factor ** 2)
    kflip = jnp.asarray(np.flip(k2, (0, 1)).copy())
    pad = tuple(pad)
    if len(pad) == 2:
        px0, px1, py0, py1 = pad[0], pad[1], pad[0], pad[1]
    else:
        px0, px1, py0, py1 = pad
    n, c, h, w = x.shape
    xb = x.reshape(n * c, 1, h, w)
    xb = jnp.pad(xb, ((0, 0), (0, 0),
                      (max(py0, 0), max(py1, 0)), (max(px0, 0), max(px1, 0))))
    xb = xb[:, :,
            max(-py0, 0): xb.shape[2] - max(-py1, 0),
            max(-px0, 0): xb.shape[3] - max(-px1, 0)]
    out = jax.lax.conv_general_dilated(
        xb, kflip[None, None, :, :], window_strides=(1, 1), padding="VALID",
        dimension_numbers=("NCHW", "OIHW", "NCHW"))
    return out.reshape(n, c, out.shape[2], out.shape[3])


if __name__ == "__main__":
    key = jax.random.PRNGKey(0)
    x = jax.random.normal(key, (2, 4, 16, 16), dtype=jnp.float32)

    configs = [
        dict(blur_kernel=(1, 3, 3, 1), pad=(2, 1), upsample_factor=1),
        dict(blur_kernel=(1, 3, 3, 1), pad=(2, 1), upsample_factor=2),
    ]
    for cfg in configs:
        out = jax.block_until_ready(blur(x, **cfg))
        ref = jax.block_until_ready(blur_reference(x, **cfg))
        assert out.shape == ref.shape, (out.shape, ref.shape)
        np.testing.assert_allclose(np.asarray(out), np.asarray(ref),
                                   rtol=1e-5, atol=1e-5)

    # Also exercise the lane-dense path (batch*channel >= 128).
    x2 = jax.random.normal(jax.random.PRNGKey(1), (2, 64, 16, 16),
                           dtype=jnp.float32)
    out2 = jax.block_until_ready(blur(x2))
    np.testing.assert_allclose(np.asarray(out2),
                               np.asarray(blur_reference(x2)),
                               rtol=1e-5, atol=1e-5)

    print("KERNEL_OK")
</pallas_src>

<mosaic_0001>
module attributes {stable_mosaic.version = 11 : i64} {
  func.func @_blur_rows_kernel(%arg0: i32, %arg1: i32, %arg2: memref<8x16x16xf32, #tpu.memory_space<vmem>>, %arg3: memref<8x16x16xf32, #tpu.memory_space<vmem>>, %arg4: memref<8x19x19xf32, #tpu.memory_space<vmem>>) attributes {dimension_semantics = [#tpu.dimension_semantics<parallel>, #tpu.dimension_semantics<arbitrary>], iteration_bounds = array<i64: 1, 1>, scalar_prefetch = 0 : i64, scratch_operands = 1 : i64, tpu.core_type = #tpu.core_type<tc>, window_params = [{transform_indices = @transform_0, window_bounds = array<i64: 8, 16, 16>}, {transform_indices = @transform_1, window_bounds = array<i64: 8, 16, 16>}]} {
    %c0_i32 = arith.constant 0 : i32
    %0 = arith.cmpi eq, %arg1, %c0_i32 : i32
    %1 = arith.extui %0 : i1 to i32
    %c0_i32_0 = arith.constant 0 : i32
    %2 = arith.cmpi ne, %1, %c0_i32_0 : i32
    scf.if %2 {
      %cst_21 = arith.constant 0.000000e+00 : f32
      %28 = vector.broadcast %cst_21 : f32 to vector<8x19x2xf32>
      %c0_22 = arith.constant 0 : index
      %c0_23 = arith.constant 0 : index
      %c0_24 = arith.constant 0 : index
      %29 = vector.load %arg4[%c0_22, %c0_23, %c0_24] : memref<8x19x19xf32, #tpu.memory_space<vmem>>, vector<8x19x2xf32>
      tpu.vector_store %arg4[%c0_22, %c0_23, %c0_24], %28 {strides = array<i32>} : memref<8x19x19xf32, #tpu.memory_space<vmem>>, vector<8x19x2xf32>,
      %cst_25 = arith.constant 0.000000e+00 : f32
      %30 = vector.broadcast %cst_25 : f32 to vector<8x19x1xf32>
      %c0_26 = arith.constant 0 : index
      %c0_27 = arith.constant 0 : index
      %c18 = arith.constant 18 : index
      %31 = vector.load %arg4[%c0_26, %c0_27, %c18] : memref<8x19x19xf32, #tpu.memory_space<vmem>>, vector<8x19x1xf32>
      tpu.vector_store %arg4[%c0_26, %c0_27, %c18], %30 {strides = array<i32>} : memref<8x19x19xf32, #tpu.memory_space<vmem>>, vector<8x19x1xf32>,
      %cst_28 = arith.constant 0.000000e+00 : f32
      %32 = vector.broadcast %cst_28 : f32 to vector<8x2x19xf32>
      %c0_29 = arith.constant 0 : index
      %c0_30 = arith.constant 0 : index
      %c0_31 = arith.constant 0 : index
      %33 = vector.load %arg4[%c0_29, %c0_30, %c0_31] : memref<8x19x19xf32, #tpu.memory_space<vmem>>, vector<8x2x19xf32>
      tpu.vector_store %arg4[%c0_29, %c0_30, %c0_31], %32 {strides = array<i32>} : memref<8x19x19xf32, #tpu.memory_space<vmem>>, vector<8x2x19xf32>,
      %cst_32 = arith.constant 0.000000e+00 : f32
      %34 = vector.broadcast %cst_32 : f32 to vector<8x1x19xf32>
      %c0_33 = arith.constant 0 : index
      %c18_34 = arith.constant 18 : index
      %c0_35 = arith.constant 0 : index
      %35 = vector.load %arg4[%c0_33, %c18_34, %c0_35] : memref<8x19x19xf32, #tpu.memory_space<vmem>>, vector<8x1x19xf32>
      tpu.vector_store %arg4[%c0_33, %c18_34, %c0_35], %34 {strides = array<i32>} : memref<8x19x19xf32, #tpu.memory_space<vmem>>, vector<8x1x19xf32>,
    } else {
    }
    %c0 = arith.constant 0 : index
    %c0_1 = arith.constant 0 : index
    %c0_2 = arith.constant 0 : index
    %3 = vector.load %arg2[%c0, %c0_1, %c0_2] : memref<8x16x16xf32, #tpu.memory_space<vmem>>, vector<8x16x16xf32>
    %c0_3 = arith.constant 0 : index
    %c2 = arith.constant 2 : index
    %c2_4 = arith.constant 2 : index
    %4 = vector.load %arg4[%c0_3, %c2, %c2_4] : memref<8x19x19xf32, #tpu.memory_space<vmem>>, vector<8x16x16xf32>
    tpu.vector_store %arg4[%c0_3, %c2, %c2_4], %3 {strides = array<i32>} : memref<8x19x19xf32, #tpu.memory_space<vmem>>, vector<8x16x16xf32>,
    %c0_5 = arith.constant 0 : index
    %c0_6 = arith.constant 0 : index
    %c0_7 = arith.constant 0 : index
    %5 = vector.load %arg4[%c0_5, %c0_6, %c0_7] : memref<8x19x19xf32, #tpu.memory_space<vmem>>, vector<8x16x19xf32>
    %c0_8 = arith.constant 0 : index
    %c3 = arith.constant 3 : index
    %c0_9 = arith.constant 0 : index
    %6 = vector.load %arg4[%c0_8, %c3, %c0_9] : memref<8x19x19xf32, #tpu.memory_space<vmem>>, vector<8x16x19xf32>
    %7 = arith.addf %5, %6 : vector<8x16x19xf32>
    %cst = arith.constant 1.250000e-01 : f32
    %8 = vector.broadcast %cst : f32 to vector<8x16x19xf32>
    %9 = arith.mulf %8, %7 : vector<8x16x19xf32>
    %c0_10 = arith.constant 0 : index
    %c1 = arith.constant 1 : index
    %c0_11 = arith.constant 0 : index
    %10 = vector.load %arg4[%c0_10, %c1, %c0_11] : memref<8x19x19xf32, #tpu.memory_space<vmem>>, vector<8x16x19xf32>
    %c0_12 = arith.constant 0 : index
    %c2_13 = arith.constant 2 : index
    %c0_14 = arith.constant 0 : index
    %11 = vector.load %arg4[%c0_12, %c2_13, %c0_14] : memref<8x19x19xf32, #tpu.memory_space<vmem>>, vector<8x16x19xf32>
    %12 = arith.addf %10, %11 : vector<8x16x19xf32>
    %cst_15 = arith.constant 3.750000e-01 : f32
    %13 = vector.broadcast %cst_15 : f32 to vector<8x16x19xf32>
    %14 = arith.mulf %13, %12 : vector<8x16x19xf32>
    %15 = arith.addf %9, %14 : vector<8x16x19xf32>
    %16 = vector.extract_strided_slice %15 {offsets = [0, 0, 0], sizes = [8, 16, 16], strides = [1, 1, 1]} : vector<8x16x19xf32> to vector<8x16x16xf32>
    %17 = vector.extract_strided_slice %15 {offsets = [0, 0, 3], sizes = [8, 16, 16], strides = [1, 1, 1]} : vector<8x16x19xf32> to vector<8x16x16xf32>
    %18 = arith.addf %16, %17 : vector<8x16x16xf32>
    %cst_16 = arith.constant 1.250000e-01 : f32
    %19 = vector.broadcast %cst_16 : f32 to vector<8x16x16xf32>
    %20 = arith.mulf %19, %18 : vector<8x16x16xf32>
    %21 = vector.extract_strided_slice %15 {offsets = [0, 0, 1], sizes = [8, 16, 16], strides = [1, 1, 1]} : vector<8x16x19xf32> to vector<8x16x16xf32>
    %22 = vector.extract_strided_slice %15 {offsets = [0, 0, 2], sizes = [8, 16, 16], strides = [1, 1, 1]} : vector<8x16x19xf32> to vector<8x16x16xf32>
    %23 = arith.addf %21, %22 : vector<8x16x16xf32>
    %cst_17 = arith.constant 3.750000e-01 : f32
    %24 = vector.broadcast %cst_17 : f32 to vector<8x16x16xf32>
    %25 = arith.mulf %24, %23 : vector<8x16x16xf32>
    %26 = arith.addf %20, %25 : vector<8x16x16xf32>
    %c0_18 = arith.constant 0 : index
    %c0_19 = arith.constant 0 : index
    %c0_20 = arith.constant 0 : index
    %27 = vector.load %arg3[%c0_18, %c0_19, %c0_20] : memref<8x16x16xf32, #tpu.memory_space<vmem>>, vector<8x16x16xf32>
    tpu.vector_store %arg3[%c0_18, %c0_19, %c0_20], %26 {strides = array<i32>} : memref<8x16x16xf32, #tpu.memory_space<vmem>>, vector<8x16x16xf32>,
    return
  }
  func.func @transform_0(%arg0: i32, %arg1: i32) -> (i32, i32, i32) {
    %c1_i32 = arith.constant 1 : i32
    %0 = arith.muli %arg0, %c1_i32 : i32
    %1 = arith.addi %0, %arg1 : i32
    %c0_i32 = arith.constant 0 : i32
    %c0_i32_0 = arith.constant 0 : i32
    %c0_i32_1 = arith.constant 0 : i32
    return %1, %c0_i32, %c0_i32_0 : i32, i32, i32
  }
  func.func @transform_1(%arg0: i32, %arg1: i32) -> (i32, i32, i32) {
    %c1_i32 = arith.constant 1 : i32
    %0 = arith.muli %arg0, %c1_i32 : i32
    %1 = arith.addi %0, %arg1 : i32
    %c0_i32 = arith.constant 0 : i32
    %c0_i32_0 = arith.constant 0 : i32
    %c0_i32_1 = arith.constant 0 : i32
    return %1, %c0_i32, %c0_i32_0 : i32, i32, i32
  }
}

</mosaic_0001>

<bundles_post_ra>
// kernel: tpu_custom_call.1
= control target key start
LH: loop header
LB: loop body
LE: loop exit
PB: predicated region body
PF: predicated region fallthrough
CT: control target
= control target key end

     0   :  { %6 = vsyncpa [#allocation4], 0  ;;  %s1096_s0 = inlined_call_operand.hbm [shape: f32[8,16,16], index: 0, kind: input, shape index: {}]   ;;  %s1097_s1 = inlined_call_operand.hbm [shape: f32[8,16,16], index: 1, kind: output, shape index: {}]  }
   0x1   :  { %7 = vsyncpa [#allocation5], 0  ;;  %s17_s8 = sshll.u32 %s1096_s0, 4  ;;  %s706_s9 = smov [#allocation3]   ;;  %s18_s8 = int_to_ptr.hbm [resolvable:$true] %s17_s8 }
   0x2   :  { %s19_s10 = sshll.u32 %s706_s9, 4  ;;  %s707_s11 = smov 128   ;;  %s20_s10 = int_to_ptr.vmem [resolvable:$true] %s19_s10 }
   0x3   :  { %s708_s12 = smov 8  }
   0x4   :  { %25 = dma.hbm_to_vmem [thread:$0]  %s18_s8, 2048, %s20_s10, [#allocation4], %s707_s11, %s707_s11, %s708_s12  }
   0x5   :  { %702 = dma.done.wait [#allocation4], 2048  }
   0x6   :  { %703 = vsyncadd [#allocation4], 4294965248  ;;  %v110_v0 = vld [vmem:[#allocation3 + $0x10] sm:$0xff]  ;;  %v108_v1 = vld [vmem:[#allocation3] sm:$0xff]  ;;  %s709_s13 = smov 2   ;;  %vm38_vm0 = vcmask 15360  }
   0x7   :  { %144 = vrot.lane.b32.xlu1 %v110_v0, %s709_s13  ;;  %140 = vrot.lane.b32.xlu0 %v108_v1, %s709_s13  ;;  %v112_v2 = vld [vmem:[#allocation3 + $0x20] sm:$0xff]  ;;  %v111_v3 = vld [vmem:[#allocation3 + $0x18] sm:$0xff]  ;;  %v109_v4 = vld [vmem:[#allocation3 + $0x8] sm:$0xff]  ;;  %v710_v6 = vmov 0.0   ;;  %vm64_vm1 = vcmask 154768   ;;  %vm90_vm2 = vcmask 148480  }
   0x8   :  { %148 = vrot.lane.b32.xlu2 %v112_v2, %s709_s13  ;;  %v113_v5 = vld [vmem:[#allocation3 + $0x28] sm:$0xff]  ;;  %46 = vst.msk [vmem:[#allocation2 + $0x30] sm:$0xff] %vm38_vm0, %v710_v6  ;;  %v115_v7 = vld [vmem:[#allocation3 + $0x38] sm:$0xff]  ;;  %v114_v8 = vld [vmem:[#allocation3 + $0x30] sm:$0xff]  ;;  %vm41_vm3 = vcmask 10240   ;;  %vm67_vm4 = vcmask 149648  }
   0x9   :  { %47 = vst.msk [vmem:[#allocation2 + $0x38] sm:$0xff] %vm38_vm0, %v710_v6  ;;  %v116_v9 = vld [vmem:[#allocation3 + $0x40] sm:$0xff]  ;;  %v118_v10 = vld [vmem:[#allocation3 + $0x50] sm:$0xff]  ;;  %v117_v11 = vld [vmem:[#allocation3 + $0x48] sm:$0xff]  ;;  %vm99_vm5 = vcmask 147456   ;;  %vm188_vm6 = vcmask 146448  }
   0xa   :  { %72 = vst.msk [vmem:[#allocation2 + $0x30] sm:$0xff] %vm64_vm1, %v710_v6  ;;  %v119_v12 = vld [vmem:[#allocation3 + $0x58] sm:$0xff]  ;;  %v121_v13 = vld [vmem:[#allocation3 + $0x68] sm:$0xff]  ;;  %v120_v14 = vld [vmem:[#allocation3 + $0x60] sm:$0xff]  ;;  %s711_s0 = smov 125   ;;  %s712_s14 = smov 127  }
   0xb   :  { %73 = vst.msk [vmem:[#allocation2 + $0x38] sm:$0xff] %vm64_vm1, %v710_v6  ;;  %v122_v15 = vld [vmem:[#allocation3 + $0x70] sm:$0xff]  ;;  %v123_v16 = vld [vmem:[#allocation3 + $0x78] sm:$0xff]  ;;  %vm605_vm7 = vcmask 130048   ;;  %s713_s15 = smov [#allocation6]   ;;  %s633_s19 = sshll.u32 %s1097_s1, 4  ;;  %s634_s19 = int_to_ptr.hbm [resolvable:$true] %s633_s19 }
   0xc   :  { %93 = vst.msk [vmem:[#allocation2 + $0x30] sm:$0x3] %vm90_vm2, %v710_v6  ;;  %s631_s16 = sshll.u32 %s713_s15, 4  ;;  %s632_s16 = int_to_ptr.vmem [resolvable:$true] %s631_s16 }
   0xd   :  { %39 = vst.msk [vmem:[#allocation2] sm:$0xff] %vm38_vm0, %v710_v6 }
   0xe   :  { %40 = vst.msk [vmem:[#allocation2 + $0x8] sm:$0xff] %vm38_vm0, %v710_v6 }
   0xf   :  { %146 = vrot.lane.b32.xlu1 %v111_v3, %s709_s13  ;;  %142 = vrot.lane.b32.xlu0 %v109_v4, %s709_s13  ;;  %43 = vst.msk [vmem:[#allocation2 + $0x18] sm:$0xff] %vm38_vm0, %v710_v6 }
  0x10   :  { %150 = vrot.lane.b32.xlu2 %v113_v5, %s709_s13  ;;  %44 = vst.msk [vmem:[#allocation2 + $0x20] sm:$0xff] %vm38_vm0, %v710_v6 }
  0x11   :  { %49 = vst.msk [vmem:[#allocation2 + $0x48] sm:$0xff] %vm38_vm0, %v710_v6 }
  0x12   :  { %50 = vst.msk [vmem:[#allocation2 + $0x50] sm:$0xff] %vm38_vm0, %v710_v6 }
  0x13   :  { %52 = vst.msk [vmem:[#allocation2 + $0x60] sm:$0xff] %vm38_vm0, %v710_v6 }
  0x14   :  { %53 = vst.msk [vmem:[#allocation2 + $0x68] sm:$0xff] %vm38_vm0, %v710_v6 }
  0x15   :  { %55 = vst.msk [vmem:[#allocation2 + $0x78] sm:$0xff] %vm38_vm0, %v710_v6 }
  0x16   :  { %56 = vst.msk [vmem:[#allocation2 + $0x80] sm:$0xff] %vm38_vm0, %v710_v6 }
  0x17   :  { %154 = vrot.lane.b32.xlu1 %v115_v7, %s709_s13  ;;  %152 = vrot.lane.b32.xlu0 %v114_v8, %s709_s13  ;;  %58 = vst.msk [vmem:[#allocation2 + $0x90] sm:$0xff] %vm38_vm0, %v710_v6 }
  0x18   :  { %156 = vrot.lane.b32.xlu2 %v116_v9, %s709_s13  ;;  %59 = vst.msk [vmem:[#allocation2 + $0x98] sm:$0xff] %vm38_vm0, %v710_v6 }
  0x19   :  { %61 = vst.msk [vmem:[#allocation2 + $0xa8] sm:$0xff] %vm38_vm0, %v710_v6 }
  0x1a   :  { %62 = vst.msk [vmem:[#allocation2 + $0xb0] sm:$0xff] %vm38_vm0, %v710_v6 }
  0x1b   :  { %69 = vst.msk [vmem:[#allocation2 + $0x18] sm:$0xff] %vm64_vm1, %v710_v6 }
  0x1c   :  { %70 = vst.msk [vmem:[#allocation2 + $0x20] sm:$0xff] %vm64_vm1, %v710_v6 }
  0x1d   :  { %92 = vst.msk [vmem:[#allocation2 + $0x18] sm:$0x3] %vm90_vm2, %v710_v6 }
  0x1e   :  { %65 = vst.msk [vmem:[#allocation2] sm:$0xff] %vm64_vm1, %v710_v6 }
  0x1f   :  { %160 = vrot.lane.b32.xlu1 %v118_v10, %s709_s13  ;;  %158 = vrot.lane.b32.xlu0 %v117_v11, %s709_s13  ;;  %66 = vst.msk [vmem:[#allocation2 + $0x8] sm:$0xff] %vm64_vm1, %v710_v6 }
  0x20   :  { %162 = vrot.lane.b32.xlu2 %v119_v12, %s709_s13  ;;  %75 = vst.msk [vmem:[#allocation2 + $0x48] sm:$0xff] %vm64_vm1, %v710_v6 }
  0x21   :  { %76 = vst.msk [vmem:[#allocation2 + $0x50] sm:$0xff] %vm64_vm1, %v710_v6 }
  0x22   :  { %78 = vst.msk [vmem:[#allocation2 + $0x60] sm:$0xff] %vm64_vm1, %v710_v6 }
  0x23   :  { %79 = vst.msk [vmem:[#allocation2 + $0x68] sm:$0xff] %vm64_vm1, %v710_v6 }
  0x24   :  { %81 = vst.msk [vmem:[#allocation2 + $0x78] sm:$0xff] %vm64_vm1, %v710_v6 }
  0x25   :  { %82 = vst.msk [vmem:[#allocation2 + $0x80] sm:$0xff] %vm64_vm1, %v710_v6 }
  0x26   :  { %84 = vst.msk [vmem:[#allocation2 + $0x90] sm:$0xff] %vm64_vm1, %v710_v6 }
  0x27   :  { %166 = vrot.lane.b32.xlu1 %v121_v13, %s709_s13  ;;  %164 = vrot.lane.b32.xlu0 %v120_v14, %s709_s13  ;;  %85 = vst.msk [vmem:[#allocation2 + $0x98] sm:$0xff] %vm64_vm1, %v710_v6 }
  0x28   :  { %168 = vrot.lane.b32.xlu2 %v122_v15, %s709_s13  ;;  %87 = vst.msk [vmem:[#allocation2 + $0xa8] sm:$0xff] %vm64_vm1, %v710_v6 }
  0x29   :  { %88 = vst.msk [vmem:[#allocation2 + $0xb0] sm:$0xff] %vm64_vm1, %v710_v6 }
  0x2a   :  { %91 = vst.msk [vmem:[#allocation2] sm:$0x3] %vm90_vm2, %v710_v6 }
  0x2b   :  { %94 = vst.msk [vmem:[#allocation2 + $0x48] sm:$0x3] %vm90_vm2, %v710_v6 }
  0x2c   :  { %95 = vst.msk [vmem:[#allocation2 + $0x60] sm:$0x3] %vm90_vm2, %v710_v6 }
  0x2d   :  { %96 = vst.msk [vmem:[#allocation2 + $0x78] sm:$0x3] %vm90_vm2, %v710_v6 }
  0x2e   :  { %97 = vst.msk [vmem:[#allocation2 + $0x90] sm:$0x3] %vm90_vm2, %v710_v6 }
  0x2f   :  { %170 = vrot.lane.b32.xlu0 %v123_v16, %s709_s13  ;;  %98 = vst.msk [vmem:[#allocation2 + $0xa8] sm:$0x3] %vm90_vm2, %v710_v6 }
  0x30   :  { %48 = vst.msk [vmem:[#allocation2 + $0x40] sm:$0x7] %vm41_vm3, %v710_v6 }
  0x31   :  { %74 = vst.msk [vmem:[#allocation2 + $0x40] sm:$0x7] %vm67_vm4, %v710_v6 }
  0x32   :  { %102 = vst.msk [vmem:[#allocation2 + $0x42] sm:$0x1] %vm99_vm5, %v710_v6 }
  0x33   :  { %42 = vst.msk [vmem:[#allocation2 + $0x10] sm:$0x7] %vm41_vm3, %v710_v6 }
  0x34   :  { %45 = vst.msk [vmem:[#allocation2 + $0x28] sm:$0x7] %vm41_vm3, %v710_v6 }
  0x35   :  { %51 = vst.msk [vmem:[#allocation2 + $0x58] sm:$0x7] %vm41_vm3, %v710_v6 }
  0x36   :  { %54 = vst.msk [vmem:[#allocation2 + $0x70] sm:$0x7] %vm41_vm3, %v710_v6 }
  0x37   :  { %57 = vst.msk [vmem:[#allocation2 + $0x88] sm:$0x7] %vm41_vm3, %v710_v6 }
  0x38   :  { %60 = vst.msk [vmem:[#allocation2 + $0xa0] sm:$0x7] %vm41_vm3, %v710_v6 }
  0x39   :  { %63 = vst.msk [vmem:[#allocation2 + $0xb8] sm:$0x7] %vm41_vm3, %v710_v6 }
  0x3a   :  { %71 = vst.msk [vmem:[#allocation2 + $0x28] sm:$0x7] %vm67_vm4, %v710_v6 }
  0x3b   :  { %101 = vst.msk [vmem:[#allocation2 + $0x2a] sm:$0x1] %vm99_vm5, %v710_v6 }
  0x3c   :  { %68 = vst.msk [vmem:[#allocation2 + $0x10] sm:$0x7] %vm67_vm4, %v710_v6 }
  0x3d   :  { %77 = vst.msk [vmem:[#allocation2 + $0x58] sm:$0x7] %vm67_vm4, %v710_v6 }
  0x3e   :  { %80 = vst.msk [vmem:[#allocation2 + $0x70] sm:$0x7] %vm67_vm4, %v710_v6 }
  0x3f   :  { %83 = vst.msk [vmem:[#allocation2 + $0x88] sm:$0x7] %vm67_vm4, %v710_v6 }
  0x40   :  { %86 = vst.msk [vmem:[#allocation2 + $0xa0] sm:$0x7] %vm67_vm4, %v710_v6 }
  0x41   :  { %89 = vst.msk [vmem:[#allocation2 + $0xb8] sm:$0x7] %vm67_vm4, %v710_v6 }
  0x42   :  { %100 = vst.msk [vmem:[#allocation2 + $0x12] sm:$0x1] %vm99_vm5, %v710_v6 }
  0x43   :  { %103 = vst.msk [vmem:[#allocation2 + $0x5a] sm:$0x1] %vm99_vm5, %v710_v6 }
  0x44   :  { %104 = vst.msk [vmem:[#allocation2 + $0x72] sm:$0x1] %vm99_vm5, %v710_v6 }
  0x45   :  { %105 = vst.msk [vmem:[#allocation2 + $0x8a] sm:$0x1] %vm99_vm5, %v710_v6 }
  0x46   :  { %106 = vst.msk [vmem:[#allocation2 + $0xa2] sm:$0x1] %vm99_vm5, %v710_v6 }
  0x47   :  { %107 = vst.msk [vmem:[#allocation2 + $0xba] sm:$0x1] %vm99_vm5, %v710_v6 }
  0x62   :  { %v149_v17 = vpop.permute.xlu2 %148 }
  0x63   :  { %193 = vst.msk [vmem:[#allocation2 + $0x32] sm:$0xff] %vm188_vm6, %v149_v17 }
  0x6a   :  { %v151_v18 = vpop.permute.xlu2 %150  ;;  %v273_v28 = vld [vmem:[#allocation2 + $0x31] sm:$0xff] }
  0x6b   :  { %194 = vst.msk [vmem:[#allocation2 + $0x3a] sm:$0xff] %vm188_vm6, %v151_v18  ;;  %v289_v31 = vld [vmem:[#allocation2 + $0x32] sm:$0xff] }
  0x6c   :  { %v209_v37 = vld [vmem:[#allocation2 + $0x30] sm:$0xff]  ;;  %v305_v52 = vadd.f32 %v289_v31, %v273_v28 }
  0x6e   :  { %v321_v14 = vmul.f32 0.375, %v305_v52 }
  0x72   :  { %v157_v19 = vpop.permute.xlu2 %156  ;;  %v210_v33 = vld [vmem:[#allocation2 + $0x38] sm:$0xff] }
  0x73   :  { %197 = vst.msk [vmem:[#allocation2 + $0x62] sm:$0xff] %vm188_vm6, %v157_v19  ;;  %v226_v34 = vld [vmem:[#allocation2 + $0x3b] sm:$0xff]  ;;  %v225_v38 = vld [vmem:[#allocation2 + $0x33] sm:$0xff] }
  0x74   :  { %v274_v35 = vld [vmem:[#allocation2 + $0x39] sm:$0xff]  ;;  %v242_v62 = vadd.f32 %v226_v34, %v210_v33  ;;  %v241_v0 = vadd.f32 %v225_v38, %v209_v37 }
  0x75   :  { %v290_v36 = vld [vmem:[#allocation2 + $0x3a] sm:$0xff] }
  0x76   :  { %v306_v63 = vadd.f32 %v290_v36, %v274_v35  ;;  %v258_v11 = vmul.f32 0.125, %v242_v62  ;;  %v257_v13 = vmul.f32 0.125, %v241_v0 }
  0x78   :  { %v322_v12 = vmul.f32 0.375, %v306_v63  ;;  %v893_v28 = vadd.f32 %v321_v14, %v257_v13 }
  0x79   :  { %v145_v20 = vpop.permute.xlu1 %144  ;;  %v141_v21 = vpop.permute.xlu0 %140 }
  0x7a   :  { %191 = vst.msk [vmem:[#allocation2 + $0x1a] sm:$0xff] %vm188_vm6, %v145_v20  ;;  %v163_v22 = vpop.permute.xlu2 %162  ;;  %v277_v15 = vld [vmem:[#allocation2 + $0x61] sm:$0xff] }
  0x7b   :  { %189 = vst.msk [vmem:[#allocation2 + $0x2] sm:$0xff] %vm188_vm6, %v141_v21  ;;  %v293_v18 = vld [vmem:[#allocation2 + $0x62] sm:$0xff] }
  0x7c   :  { %200 = vst.msk [vmem:[#allocation2 + $0x82] sm:$0xff] %vm188_vm6, %v163_v22  ;;  %v213_v31 = vld [vmem:[#allocation2 + $0x60] sm:$0xff] }
  0x81   :  { %v147_v23 = vpop.permute.xlu1 %146  ;;  %v143_v24 = vpop.permute.xlu0 %142  ;;  %v271_v26 = vld [vmem:[#allocation2 + $0x19] sm:$0xff] }
  0x82   :  { %192 = vst.msk [vmem:[#allocation2 + $0x22] sm:$0xff] %vm188_vm6, %v147_v23  ;;  %v169_v25 = vpop.permute.xlu2 %168  ;;  %v287_v27 = vld [vmem:[#allocation2 + $0x1a] sm:$0xff]  ;;  %v285_v30 = vld [vmem:[#allocation2 + $0x2] sm:$0xff] }
  0x83   :  { %190 = vst.msk [vmem:[#allocation2 + $0xa] sm:$0xff] %vm188_vm6, %v143_v24  ;;  %v269_v29 = vld [vmem:[#allocation2 + $0x1] sm:$0xff]  ;;  %v303_v32 = vadd.f32 %v287_v27, %v271_v26  ;;  %v207_v41 = vld [vmem:[#allocation2 + $0x18] sm:$0xff]  ;;  %v891_v27 = vadd.f32 %v322_v12, %v258_v11 }
  0x84   :  { %203 = vst.msk [vmem:[#allocation2 + $0xaa] sm:$0xff] %vm188_vm6, %v169_v25  ;;  %v205_v43 = vld [vmem:[#allocation2] sm:$0xff]  ;;  %v301_v48 = vadd.f32 %v285_v30, %v269_v29  ;;  %v309_v30 = vadd.f32 %v293_v18, %v277_v15 }
  0x85   :  { %v319_v55 = vmul.f32 0.375, %v303_v32 }
  0x86   :  { %v317_v4 = vmul.f32 0.375, %v301_v48 }
  0x89   :  { %v155_v39 = vpop.permute.xlu1 %154  ;;  %v153_v40 = vpop.permute.xlu0 %152  ;;  %v223_v42 = vld [vmem:[#allocation2 + $0x1b] sm:$0xff]  ;;  %v224_v58 = vld [vmem:[#allocation2 + $0x23] sm:$0xff] }
  0x8a   :  { %196 = vst.msk [vmem:[#allocation2 + $0x52] sm:$0xff] %vm188_vm6, %v155_v39  ;;  %v239_v44 = vadd.f32 %v223_v42, %v207_v41  ;;  %v206_v45 = vld [vmem:[#allocation2 + $0x8] sm:$0xff]  ;;  %v208_v53 = vld [vmem:[#allocation2 + $0x20] sm:$0xff] }
  0x8b   :  { %v222_v46 = vld [vmem:[#allocation2 + $0xb] sm:$0xff]  ;;  %195 = vst.msk [vmem:[#allocation2 + $0x4a] sm:$0xff] %vm188_vm6, %v153_v40  ;;  %v221_v51 = vld [vmem:[#allocation2 + $0x3] sm:$0xff]  ;;  %v240_v5 = vadd.f32 %v224_v58, %v208_v53 }
  0x8c   :  { %v270_v47 = vld [vmem:[#allocation2 + $0x9] sm:$0xff]  ;;  %v238_v49 = vadd.f32 %v222_v46, %v206_v45  ;;  %v255_v54 = vmul.f32 0.125, %v239_v44  ;;  %v237_v57 = vadd.f32 %v221_v51, %v205_v43  ;;  %v272_v59 = vld [vmem:[#allocation2 + $0x21] sm:$0xff]  ;;  %v325_v45 = vmul.f32 0.375, %v309_v30 }
  0x8d   :  { %v286_v50 = vld [vmem:[#allocation2 + $0xa] sm:$0xff]  ;;  %v288_v60 = vld [vmem:[#allocation2 + $0x22] sm:$0xff]  ;;  %v256_v16 = vmul.f32 0.125, %v240_v5 }
  0x8e   :  { %v302_v56 = vadd.f32 %v286_v50, %v270_v47  ;;  %v254_v61 = vmul.f32 0.125, %v238_v49  ;;  %v877_v1 = vadd.f32 %v319_v55, %v255_v54  ;;  %v253_v3 = vmul.f32 0.125, %v237_v57  ;;  %v232_v39 = vld [vmem:[#allocation2 + $0x83] sm:$0xff] }
  0x8f   :  { %v304_v6 = vadd.f32 %v288_v60, %v272_v59  ;;  %v296_v40 = vld [vmem:[#allocation2 + $0x82] sm:$0xff]  ;;  %v299_v12 = vld [vmem:[#allocation2 + $0xaa] sm:$0xff] }
  0x90   :  { %v318_v2 = vmul.f32 0.375, %v302_v56  ;;  %369 = vrot.lane.b32.xlu0 %v877_v1, %s711_s0  ;;  %v883_v8 = vadd.f32 %v317_v4, %v253_v3  ;;  %v283_v11 = vld [vmem:[#allocation2 + $0xa9] sm:$0xff] }
  0x91   :  { %v161_v9 = vpop.permute.xlu1 %160  ;;  %v159_v10 = vpop.permute.xlu0 %158  ;;  %v320_v17 = vmul.f32 0.375, %v304_v6  ;;  %v228_v19 = vld [vmem:[#allocation2 + $0x53] sm:$0xff] }
  0x92   :  { %v881_v7 = vadd.f32 %v318_v2, %v254_v61  ;;  %365 = vrot.lane.b32.xlu1 %v883_v8, %s711_s0  ;;  %199 = vst.msk [vmem:[#allocation2 + $0x7a] sm:$0xff] %vm188_vm6, %v161_v9  ;;  %v292_v20 = vld [vmem:[#allocation2 + $0x52] sm:$0xff]  ;;  %v211_v23 = vld [vmem:[#allocation2 + $0x48] sm:$0xff] }
  0x93   :  { %198 = vst.msk [vmem:[#allocation2 + $0x6a] sm:$0xff] %vm188_vm6, %v159_v10  ;;  %v212_v21 = vld [vmem:[#allocation2 + $0x50] sm:$0xff]  ;;  %v895_v29 = vadd.f32 %v320_v17, %v256_v16 }
  0x94   :  { %367 = vrot.lane.b32.xlu2 %v881_v7, %s711_s0  ;;  %v276_v22 = vld [vmem:[#allocation2 + $0x51] sm:$0xff]  ;;  %v275_v25 = vld [vmem:[#allocation2 + $0x49] sm:$0xff]  ;;  %v244_v32 = vadd.f32 %v228_v19, %v212_v21 }
  0x95   :  { %v227_v24 = vld [vmem:[#allocation2 + $0x4b] sm:$0xff]  ;;  %v308_v33 = vadd.f32 %v292_v20, %v276_v22 }
  0x96   :  { %v291_v26 = vld [vmem:[#allocation2 + $0x4a] sm:$0xff]  ;;  %v243_v34 = vadd.f32 %v227_v24, %v211_v23  ;;  %v260_v49 = vmul.f32 0.125, %v244_v32 }
  0x97   :  { %v307_v35 = vadd.f32 %v291_v26, %v275_v25  ;;  %v324_v50 = vmul.f32 0.375, %v308_v33  ;;  %v315_v25 = vadd.f32 %v299_v12, %v283_v11  ;;  %v219_v26 = vld [vmem:[#allocation2 + $0xa8] sm:$0xff] }
  0x98   :  { %375 = vrot.lane.b32.xlu0 %v891_v27, %s711_s0  ;;  %v259_v51 = vmul.f32 0.125, %v243_v34 }
  0x99   :  { %v167_v36 = vpop.permute.xlu1 %166  ;;  %v165_v37 = vpop.permute.xlu0 %164  ;;  %v216_v38 = vld [vmem:[#allocation2 + $0x80] sm:$0xff]  ;;  %v215_v43 = vld [vmem:[#allocation2 + $0x78] sm:$0xff]  ;;  %v323_v52 = vmul.f32 0.375, %v307_v35  ;;  %v907_v63 = vadd.f32 %v324_v50, %v260_v49 }
  0x9a   :  { %371 = vrot.lane.b32.xlu1 %v895_v29, %s711_s0  ;;  %202 = vst.msk [vmem:[#allocation2 + $0x9a] sm:$0xff] %vm188_vm6, %v167_v36  ;;  %v229_v41 = vld [vmem:[#allocation2 + $0x63] sm:$0xff]  ;;  %v231_v46 = vld [vmem:[#allocation2 + $0x7b] sm:$0xff]  ;;  %v248_v55 = vadd.f32 %v232_v39, %v216_v38  ;;  %v230_v57 = vld [vmem:[#allocation2 + $0x6b] sm:$0xff] }
  0x9b   :  { %v280_v42 = vld [vmem:[#allocation2 + $0x81] sm:$0xff]  ;;  %201 = vst.msk [vmem:[#allocation2 + $0x92] sm:$0xff] %vm188_vm6, %v165_v37  ;;  %v245_v44 = vadd.f32 %v229_v41, %v213_v31  ;;  %v279_v47 = vld [vmem:[#allocation2 + $0x79] sm:$0xff]  ;;  %v278_v58 = vld [vmem:[#allocation2 + $0x69] sm:$0xff]  ;;  %v247_v60 = vadd.f32 %v231_v46, %v215_v43  ;;  %v909_v0 = vadd.f32 %v323_v52, %v259_v51  ;;  %v331_v37 = vmul.f32 0.375, %v315_v25 }
  0x9c   :  { %373 = vrot.lane.b32.xlu2 %v893_v28, %s711_s0  ;;  %v295_v48 = vld [vmem:[#allocation2 + $0x7a] sm:$0xff]  ;;  %v214_v53 = vld [vmem:[#allocation2 + $0x68] sm:$0xff]  ;;  %v312_v56 = vadd.f32 %v296_v40, %v280_v42  ;;  %v264_v5 = vmul.f32 0.125, %v248_v55 }
  0x9d   :  { %v261_v54 = vmul.f32 0.125, %v245_v44  ;;  %v294_v59 = vld [vmem:[#allocation2 + $0x6a] sm:$0xff]  ;;  %v311_v61 = vadd.f32 %v295_v48, %v279_v47  ;;  %v246_v2 = vadd.f32 %v230_v57, %v214_v53  ;;  %v263_v9 = vmul.f32 0.125, %v247_v60 }
  0x9e   :  { %v310_v3 = vadd.f32 %v294_v59, %v278_v58  ;;  %v328_v6 = vmul.f32 0.375, %v312_v56 }
  0x9f   :  { %v905_v62 = vadd.f32 %v325_v45, %v261_v54  ;;  %v327_v10 = vmul.f32 0.375, %v311_v61  ;;  %v262_v15 = vmul.f32 0.125, %v246_v2 }
  0xa0   :  { %v326_v16 = vmul.f32 0.375, %v310_v3  ;;  %v918_v20 = vadd.f32 %v328_v6, %v264_v5 }
  0xa1   :  { %381 = vrot.lane.b32.xlu0 %v905_v62, %s711_s0  ;;  %v171_v4 = vpop.permute.xlu0 %170  ;;  %v234_v13 = vld [vmem:[#allocation2 + $0x9b] sm:$0xff]  ;;  %v920_v24 = vadd.f32 %v327_v10, %v263_v9 }
  0xa2   :  { %377 = vrot.lane.b32.xlu1 %v909_v0, %s711_s0  ;;  %204 = vst.msk [vmem:[#allocation2 + $0xb2] sm:$0xff] %vm188_vm6, %v171_v4  ;;  %v298_v14 = vld [vmem:[#allocation2 + $0x9a] sm:$0xff]  ;;  %v217_v19 = vld [vmem:[#allocation2 + $0x90] sm:$0xff]  ;;  %v922_v31 = vadd.f32 %v326_v16, %v262_v15 }
  0xa3   :  { %v218_v17 = vld [vmem:[#allocation2 + $0x98] sm:$0xff] }
  0xa4   :  { %379 = vrot.lane.b32.xlu2 %v907_v63, %s711_s0  ;;  %v282_v18 = vld [vmem:[#allocation2 + $0x99] sm:$0xff]  ;;  %v281_v22 = vld [vmem:[#allocation2 + $0x91] sm:$0xff]  ;;  %v250_v30 = vadd.f32 %v234_v13, %v218_v17 }
  0xa5   :  { %v233_v21 = vld [vmem:[#allocation2 + $0x93] sm:$0xff]  ;;  %v314_v32 = vadd.f32 %v298_v14, %v282_v18 }
  0xa6   :  { %v297_v23 = vld [vmem:[#allocation2 + $0x92] sm:$0xff]  ;;  %v249_v33 = vadd.f32 %v233_v21, %v217_v19  ;;  %v266_v38 = vmul.f32 0.125, %v250_v30 }
  0xa7   :  { %v313_v34 = vadd.f32 %v297_v23, %v281_v22  ;;  %v330_v40 = vmul.f32 0.375, %v314_v32 }
  0xa8   :  { %v265_v41 = vmul.f32 0.125, %v249_v33 }
  0xa9   :  { %387 = vrot.lane.b32.xlu0 %v918_v20, %s711_s0  ;;  %v235_v35 = vld [vmem:[#allocation2 + $0xab] sm:$0xff]  ;;  %v329_v42 = vmul.f32 0.375, %v313_v34  ;;  %v236_v44 = vld [vmem:[#allocation2 + $0xb3] sm:$0xff]  ;;  %v932_v48 = vadd.f32 %v330_v40, %v266_v38 }
  0xaa   :  { %383 = vrot.lane.b32.xlu1 %v922_v31, %s711_s0  ;;  %v251_v36 = vadd.f32 %v235_v35, %v219_v26  ;;  %v220_v43 = vld [vmem:[#allocation2 + $0xb0] sm:$0xff] }
  0xab   :  { %v284_v45 = vld [vmem:[#allocation2 + $0xb1] sm:$0xff]  ;;  %v934_v49 = vadd.f32 %v329_v42, %v265_v41  ;;  %v252_v50 = vadd.f32 %v236_v44, %v220_v43 }
  0xac   :  { %385 = vrot.lane.b32.xlu2 %v920_v24, %s711_s0  ;;  %v267_v39 = vmul.f32 0.125, %v251_v36  ;;  %v300_v46 = vld [vmem:[#allocation2 + $0xb2] sm:$0xff] }
  0xad   :  { %v316_v51 = vadd.f32 %v300_v46, %v284_v45  ;;  %v268_v52 = vmul.f32 0.125, %v252_v50 }
  0xae   :  { %v930_v47 = vadd.f32 %v331_v37, %v267_v39 }
  0xaf   :  { %v332_v53 = vmul.f32 0.375, %v316_v51 }
  0xb1   :  { %393 = vrot.lane.b32.xlu0 %v930_v47, %s711_s0  ;;  %v942_v54 = vadd.f32 %v332_v53, %v268_v52 }
  0xb2   :  { %389 = vrot.lane.b32.xlu1 %v934_v49, %s711_s0 }
  0xb4   :  { %391 = vrot.lane.b32.xlu2 %v932_v48, %s711_s0 }
  0xb9   :  { %447 = vrot.lane.b32.xlu0 %v881_v7, %s712_s14 }
  0xba   :  { %395 = vrot.lane.b32.xlu1 %v942_v54, %s711_s0 }
  0xbc   :  { %445 = vrot.lane.b32.xlu2 %v883_v8, %s712_s14 }
  0xc1   :  { %453 = vrot.lane.b32.xlu0 %v893_v28, %s712_s14 }
  0xc2   :  { %449 = vrot.lane.b32.xlu1 %v877_v1, %s712_s14 }
  0xc4   :  { %451 = vrot.lane.b32.xlu2 %v895_v29, %s712_s14 }
  0xc9   :  { %459 = vrot.lane.b32.xlu0 %v907_v63, %s712_s14 }
  0xca   :  { %455 = vrot.lane.b32.xlu1 %v891_v27, %s712_s14 }
  0xcc   :  { %457 = vrot.lane.b32.xlu2 %v909_v0, %s712_s14 }
  0xd1   :  { %465 = vrot.lane.b32.xlu0 %v920_v24, %s712_s14 }
  0xd2   :  { %461 = vrot.lane.b32.xlu1 %v905_v62, %s712_s14 }
  0xd4   :  { %463 = vrot.lane.b32.xlu2 %v922_v31, %s712_s14 }
  0xd9   :  { %471 = vrot.lane.b32.xlu0 %v932_v48, %s712_s14 }
  0xda   :  { %467 = vrot.lane.b32.xlu1 %v918_v20, %s712_s14 }
  0xdc   :  { %469 = vrot.lane.b32.xlu2 %v934_v49, %s712_s14 }
  0xe2   :  { %473 = vrot.lane.b32.xlu1 %v930_v47, %s712_s14 }
  0xe4   :  { %475 = vrot.lane.b32.xlu2 %v942_v54, %s712_s14 }
  0xee   :  { %v978_v55 = vpop.permute.xlu2 %367 }
  0xf6   :  { %v980_v56 = vpop.permute.xlu2 %373 }
  0xfe   :  { %v982_v57 = vpop.permute.xlu2 %379 }
 0x102   :  { %v984_v58 = vpop.permute.xlu0 %369 }
 0x104   :  { %v988_v60 = vpop.permute.xlu1 %365 }
 0x106   :  { %v986_v59 = vpop.permute.xlu2 %385 }
 0x10a   :  { %v990_v61 = vpop.permute.xlu0 %375 }
 0x10c   :  { %v994_v3 = vpop.permute.xlu1 %371 }
 0x10e   :  { %v992_v2 = vpop.permute.xlu2 %391 }
 0x113   :  { %v996_v4 = vpop.permute.xlu0 %381 }
 0x114   :  { %v998_v6 = vpop.permute.xlu1 %377 }
 0x116   :  { %v446_v5 = vpop.permute.xlu2 %445 }
 0x117   :  { %v493_v9 = vadd.f32 %v446_v5, %v883_v8 }
 0x119   :  { %v509_v10 = vmul.f32 0.375, %v493_v9 }
 0x11b   :  { %541 = vrot.lane.b32.xlu0 %v509_v10, %s712_s14  ;;  %v1002_v11 = vpop.permute.xlu0 %387 }
 0x11c   :  { %v1004_v13 = vpop.permute.xlu1 %383 }
 0x11e   :  { %v452_v12 = vpop.permute.xlu2 %451 }
 0x11f   :  { %v496_v14 = vadd.f32 %v452_v12, %v895_v29 }
 0x121   :  { %v512_v15 = vmul.f32 0.375, %v496_v14 }
 0x123   :  { %547 = vrot.lane.b32.xlu0 %v512_v15, %s712_s14  ;;  %v1008_v16 = vpop.permute.xlu0 %393 }
 0x124   :  { %v1010_v18 = vpop.permute.xlu1 %389 }
 0x126   :  { %v458_v17 = vpop.permute.xlu2 %457 }
 0x127   :  { %v499_v19 = vadd.f32 %v458_v17, %v909_v0 }
 0x129   :  { %v515_v21 = vmul.f32 0.375, %v499_v19 }
 0x12b   :  { %553 = vrot.lane.b32.xlu0 %v515_v21, %s712_s14  ;;  %v448_v22 = vpop.permute.xlu0 %447 }
 0x12c   :  { %v494_v23 = vadd.f32 %v448_v22, %v881_v7  ;;  %v1015_v26 = vpop.permute.xlu1 %395 }
 0x12e   :  { %v464_v25 = vpop.permute.xlu2 %463  ;;  %v510_v32 = vmul.f32 0.375, %v494_v23 }
 0x12f   :  { %v502_v30 = vadd.f32 %v464_v25, %v922_v31 }
 0x130   :  { %543 = vrot.lane.b32.xlu1 %v510_v32, %s712_s14 }
 0x131   :  { %v518_v33 = vmul.f32 0.375, %v502_v30 }
 0x133   :  { %559 = vrot.lane.b32.xlu0 %v518_v33, %s712_s14  ;;  %v454_v34 = vpop.permute.xlu0 %453 }
 0x134   :  { %v497_v35 = vadd.f32 %v454_v34, %v893_v28  ;;  %v450_v37 = vpop.permute.xlu1 %449 }
 0x135   :  { %v495_v39 = vadd.f32 %v450_v37, %v877_v1 }
 0x136   :  { %v470_v36 = vpop.permute.xlu2 %469  ;;  %v513_v40 = vmul.f32 0.375, %v497_v35  ;;  %v413_v35 = vadd.f32 %v988_v60, %v883_v8  ;;  %v418_v8 = vadd.f32 %v990_v61, %v891_v27  ;;  %v419_v60 = vadd.f32 %v998_v6, %v909_v0 }
 0x137   :  { %v505_v38 = vadd.f32 %v470_v36, %v934_v49  ;;  %v511_v42 = vmul.f32 0.375, %v495_v39  ;;  %v415_v39 = vadd.f32 %v984_v58, %v877_v1 }
 0x138   :  { %549 = vrot.lane.b32.xlu1 %v513_v40, %s712_s14  ;;  %v429_v36 = vmul.f32 0.125, %v413_v35  ;;  %v416_v40 = vadd.f32 %v994_v3, %v895_v29  ;;  %v434_v1 = vmul.f32 0.125, %v418_v8  ;;  %v435_v29 = vmul.f32 0.125, %v419_v60 }
 0x139   :  { %v521_v41 = vmul.f32 0.375, %v505_v38  ;;  %545 = vrot.lane.b32.xlu2 %v511_v42, %s712_s14  ;;  %v423_v35 = vadd.f32 %v986_v59, %v920_v24 }
 0x13a   :  { %v432_v42 = vmul.f32 0.125, %v416_v40 }
 0x13b   :  { %565 = vrot.lane.b32.xlu0 %v521_v41, %s712_s14  ;;  %v460_v43 = vpop.permute.xlu0 %459  ;;  %v431_v41 = vmul.f32 0.125, %v415_v39 }
 0x13c   :  { %v500_v44 = vadd.f32 %v460_v43, %v907_v63  ;;  %v456_v46 = vpop.permute.xlu1 %455 }
 0x13d   :  { %v498_v51 = vadd.f32 %v456_v46, %v891_v27  ;;  %v422_v27 = vadd.f32 %v1004_v13, %v922_v31  ;;  %v425_v31 = vadd.f32 %v1010_v18, %v934_v49  ;;  %v428_v49 = vadd.f32 %v1015_v26, %v942_v54 }
 0x13e   :  { %v476_v45 = vpop.permute.xlu2 %475  ;;  %v516_v52 = vmul.f32 0.375, %v500_v44  ;;  %v426_v26 = vadd.f32 %v992_v2, %v932_v48 }
 0x13f   :  { %v508_v50 = vadd.f32 %v476_v45, %v942_v54  ;;  %v514_v5 = vmul.f32 0.375, %v498_v51  ;;  %v438_v6 = vmul.f32 0.125, %v422_v27  ;;  %v441_v13 = vmul.f32 0.125, %v425_v31 }
 0x140   :  { %555 = vrot.lane.b32.xlu1 %v516_v52, %s712_s14  ;;  %v414_v52 = vadd.f32 %v978_v55, %v881_v7  ;;  %v417_v7 = vadd.f32 %v980_v56, %v893_v28 }
 0x141   :  { %v524_v53 = vmul.f32 0.375, %v508_v50  ;;  %551 = vrot.lane.b32.xlu2 %v514_v5, %s712_s14 }
 0x142   :  { %v430_v0 = vmul.f32 0.125, %v414_v52  ;;  %v433_v55 = vmul.f32 0.125, %v417_v7 }
 0x143   :  { %571 = vrot.lane.b32.xlu0 %v524_v53, %s712_s14  ;;  %v466_v9 = vpop.permute.xlu0 %465  ;;  %v421_v53 = vadd.f32 %v996_v4, %v905_v62 }
 0x144   :  { %v503_v10 = vadd.f32 %v466_v9, %v920_v24  ;;  %v462_v12 = vpop.permute.xlu1 %461  ;;  %v442_v24 = vmul.f32 0.125, %v426_v26 }
 0x145   :  { %v501_v14 = vadd.f32 %v462_v12, %v905_v62  ;;  %v437_v61 = vmul.f32 0.125, %v421_v53  ;;  %v424_v62 = vadd.f32 %v1002_v11, %v918_v20 }
 0x146   :  { %v519_v15 = vmul.f32 0.375, %v503_v10 }
 0x147   :  { %v517_v17 = vmul.f32 0.375, %v501_v14  ;;  %v440_v4 = vmul.f32 0.125, %v424_v62 }
 0x148   :  { %561 = vrot.lane.b32.xlu1 %v519_v15, %s712_s14 }
 0x149   :  { %557 = vrot.lane.b32.xlu2 %v517_v17, %s712_s14 }
 0x14b   :  { %v472_v19 = vpop.permute.xlu0 %471 }
 0x14c   :  { %v506_v21 = vadd.f32 %v472_v19, %v932_v48  ;;  %v468_v22 = vpop.permute.xlu1 %467 }
 0x14d   :  { %v504_v23 = vadd.f32 %v468_v22, %v918_v20  ;;  %v427_v20 = vadd.f32 %v1008_v16, %v930_v47 }
 0x14e   :  { %v522_v25 = vmul.f32 0.375, %v506_v21 }
 0x14f   :  { %v520_v30 = vmul.f32 0.375, %v504_v23  ;;  %v420_v23 = vadd.f32 %v982_v57, %v907_v63  ;;  %v443_v18 = vmul.f32 0.125, %v427_v20 }
 0x150   :  { %567 = vrot.lane.b32.xlu1 %v522_v25, %s712_s14  ;;  %v444_v25 = vmul.f32 0.125, %v428_v49 }
 0x151   :  { %563 = vrot.lane.b32.xlu2 %v520_v30, %s712_s14  ;;  %v436_v11 = vmul.f32 0.125, %v420_v23 }
 0x154   :  { %v474_v32 = vpop.permute.xlu1 %473 }
 0x155   :  { %v507_v33 = vadd.f32 %v474_v32, %v930_v47  ;;  %v439_v47 = vmul.f32 0.125, %v423_v35 }
 0x157   :  { %v523_v34 = vmul.f32 0.375, %v507_v33 }
 0x159   :  { %569 = vrot.lane.b32.xlu2 %v523_v34, %s712_s14 }
 0x18d   :  { %v542_v37 = vpop.permute.xlu0 %541 }
 0x18e   :  { %v589_v38 = vadd.f32 %v542_v37, %v429_v36 }
 0x190   :  { %606 = vst.msk [vmem:[#allocation6] sm:$0xff] %vm605_vm7, %v589_v38 }
 0x193   :  { %v546_v44 = vpop.permute.xlu2 %545 }
 0x194   :  { %v591_v46 = vadd.f32 %v546_v44, %v431_v41 }
 0x195   :  { %v548_v43 = vpop.permute.xlu0 %547 }
 0x196   :  { %v592_v45 = vadd.f32 %v548_v43, %v432_v42  ;;  %608 = vst.msk [vmem:[#allocation6 + $0x10] sm:$0xff] %vm605_vm7, %v591_v46 }
 0x198   :  { %609 = vst.msk [vmem:[#allocation6 + $0x18] sm:$0xff] %vm605_vm7, %v592_v45 }
 0x19b   :  { %v552_v3 = vpop.permute.xlu2 %551 }
 0x19c   :  { %v594_v51 = vadd.f32 %v552_v3, %v434_v1 }
 0x19d   :  { %v554_v58 = vpop.permute.xlu0 %553 }
 0x19e   :  { %v595_v50 = vadd.f32 %v554_v58, %v435_v29  ;;  %611 = vst.msk [vmem:[#allocation6 + $0x28] sm:$0xff] %vm605_vm7, %v594_v51 }
 0x1a0   :  { %612 = vst.msk [vmem:[#allocation6 + $0x30] sm:$0xff] %vm605_vm7, %v595_v50 }
 0x1a2   :  { %v544_v5 = vpop.permute.xlu1 %543 }
 0x1a3   :  { %v558_v10 = vpop.permute.xlu2 %557  ;;  %v590_v12 = vadd.f32 %v544_v5, %v430_v0 }
 0x1a4   :  { %v597_v15 = vadd.f32 %v558_v10, %v437_v61 }
 0x1a5   :  { %v560_v9 = vpop.permute.xlu0 %559  ;;  %607 = vst.msk [vmem:[#allocation6 + $0x8] sm:$0xff] %vm605_vm7, %v590_v12 }
 0x1a6   :  { %v598_v14 = vadd.f32 %v560_v9, %v438_v6  ;;  %614 = vst.msk [vmem:[#allocation6 + $0x40] sm:$0xff] %vm605_vm7, %v597_v15 }
 0x1a8   :  { %615 = vst.msk [vmem:[#allocation6 + $0x48] sm:$0xff] %vm605_vm7, %v598_v14 }
 0x1aa   :  { %v550_v17 = vpop.permute.xlu1 %549 }
 0x1ab   :  { %v564_v21 = vpop.permute.xlu2 %563  ;;  %v593_v22 = vadd.f32 %v550_v17, %v433_v55 }
 0x1ac   :  { %v600_v56 = vadd.f32 %v564_v21, %v440_v4 }
 0x1ad   :  { %v566_v19 = vpop.permute.xlu0 %565  ;;  %610 = vst.msk [vmem:[#allocation6 + $0x20] sm:$0xff] %vm605_vm7, %v593_v22 }
 0x1ae   :  { %v601_v28 = vadd.f32 %v566_v19, %v441_v13  ;;  %617 = vst.msk [vmem:[#allocation6 + $0x58] sm:$0xff] %vm605_vm7, %v600_v56 }
 0x1b0   :  { %618 = vst.msk [vmem:[#allocation6 + $0x60] sm:$0xff] %vm605_vm7, %v601_v28 }
 0x1b2   :  { %v556_v30 = vpop.permute.xlu1 %555 }
 0x1b3   :  { %v570_v33 = vpop.permute.xlu2 %569  ;;  %v596_v34 = vadd.f32 %v556_v30, %v436_v11 }
 0x1b4   :  { %v603_v57 = vadd.f32 %v570_v33, %v443_v18 }
 0x1b5   :  { %v572_v32 = vpop.permute.xlu0 %571  ;;  %613 = vst.msk [vmem:[#allocation6 + $0x38] sm:$0xff] %vm605_vm7, %v596_v34 }
 0x1b6   :  { %v604_v63 = vadd.f32 %v572_v32, %v444_v25  ;;  %620 = vst.msk [vmem:[#allocation6 + $0x70] sm:$0xff] %vm605_vm7, %v603_v57 }
 0x1b8   :  { %621 = vst.msk [vmem:[#allocation6 + $0x78] sm:$0xff] %vm605_vm7, %v604_v63 }
 0x1ba   :  { %v562_v54 = vpop.permute.xlu1 %561 }
 0x1bb   :  { %v599_v16 = vadd.f32 %v562_v54, %v439_v47 }
 0x1bd   :  { %616 = vst.msk [vmem:[#allocation6 + $0x50] sm:$0xff] %vm605_vm7, %v599_v16 }
 0x1c2   :  { %v568_v59 = vpop.permute.xlu1 %567 }
 0x1c3   :  { %v602_v36 = vadd.f32 %v568_v59, %v442_v24 }
 0x1c5   :  { %619 = vst.msk [vmem:[#allocation6 + $0x68] sm:$0xff] %vm605_vm7, %v602_v36 }
 0x1c6   :  { %639 = dma.vmem_to_hbm [thread:$0]  %s632_s16, 2048, %s634_s19, [#allocation5], %s707_s11, %s707_s11, %s708_s12  }
 0x1c7   :  { %704 = dma.done.wait [#allocation5], 2048  }
 0x1c8   :  { %705 = vsyncadd [#allocation5], 4294965248 }
 0x1c9   :  { %644 = vsyncpa [#allocation4], 1 }
 0x1ca   :  { %645 = vsyncpa [#allocation5], 1 }

</bundles_post_ra>
